<compile_context>
chip_gen: v6e
topology: v6e:2x2x1
jax: 0.10.0
libtpu: 0.0.40
codegen_flags: <defaults>
</compile_context>

<pallas_src>
import math
from functools import partial

import jax
import jax.numpy as jnp
from jax.experimental import pallas as pl
from jax.experimental.pallas import tpu as pltpu

_LANE = 128


# ------------------------------------------------------------------------
# Path A: one sample per block, feature axis tiled (large per-sample data).
# ------------------------------------------------------------------------
def _per_sample_kernel(keep_ref, x_ref, o_ref):
    # keep_ref: SMEM (B,) int32 scalar-prefetch (1 = keep, 0 = drop)
    # x_ref/o_ref: VMEM (1, tS, 128)
    b = pl.program_id(0)
    keep = keep_ref[b]

    @pl.when(keep != 0)
    def _copy():
        o_ref[...] = x_ref[...]

    @pl.when(keep == 0)
    def _zero():
        o_ref[...] = jnp.zeros_like(o_ref)


def _per_sample_call(keep_i32, x3, *, tS):
    B, S, _ = x3.shape
    return pl.pallas_call(
        _per_sample_kernel,
        out_shape=jax.ShapeDtypeStruct(x3.shape, x3.dtype),
        grid_spec=pltpu.PrefetchScalarGridSpec(
            num_scalar_prefetch=1,
            grid=(B, pl.cdiv(S, tS)),
            # Dropped samples always map to input block (0, 0, 0): consecutive
            # identical block indices elide the input DMA. The kernel never
            # reads x_ref for dropped samples, so correctness is unaffected.
            in_specs=[pl.BlockSpec(
                (1, tS, _LANE),
                lambda b, s, keep: (b * keep[b], s * keep[b], 0))],
            out_specs=pl.BlockSpec(
                (1, tS, _LANE),
                lambda b, s, keep: (b, s, 0)),
        ),
        compiler_params=pltpu.CompilerParams(
            dimension_semantics=("parallel", "parallel")),
    )(keep_i32, x3)


# ------------------------------------------------------------------------
# Path B: several samples per block (small per-sample data).
# ------------------------------------------------------------------------
def _batched_kernel(keep_ref, x_ref, o_ref):
    # keep_ref: VMEM (tB, 1, 1) int32; x_ref/o_ref: VMEM (tB, S, 128)
    x = x_ref[...]
    o_ref[...] = jnp.where(keep_ref[...] != 0, x, jnp.zeros_like(x))


def _batched_call(keep_i32, x3, *, tB):
    B, S, _ = x3.shape
    keep3 = keep_i32.reshape(B, 1, 1)
    return pl.pallas_call(
        _batched_kernel,
        out_shape=jax.ShapeDtypeStruct(x3.shape, x3.dtype),
        grid=(pl.cdiv(B, tB),),
        in_specs=[pl.BlockSpec((tB, 1, 1), lambda i: (i, 0, 0)),
                  pl.BlockSpec((tB, S, _LANE), lambda i: (i, 0, 0))],
        out_specs=pl.BlockSpec((tB, S, _LANE), lambda i: (i, 0, 0)),
        compiler_params=pltpu.CompilerParams(
            dimension_semantics=("parallel",)),
    )(keep3, x3)


# ------------------------------------------------------------------------
# Path C: in-place / donated. x and out share the HBM buffer; kept samples
# touch zero bytes, dropped samples are zero-filled by manual DMA.
# ------------------------------------------------------------------------
def _inplace_kernel(keep_ref, x_hbm, o_hbm, zeros_ref, sem, *, zS, n_full, rem):
    # keep_ref: SMEM (B,) int32; x_hbm/o_hbm: HBM (B, S, 128), aliased.
    del x_hbm  # aliased with o_hbm; kept samples are already correct in place
    b = pl.program_id(0)
    zeros_ref[...] = jnp.zeros_like(zeros_ref)  # cheap VMEM init, every step

    @pl.when(keep_ref[b] == 0)
    def _zero_fill():
        @pl.loop(0, n_full)
        def _(c):
            cp = pltpu.make_async_copy(
                zeros_ref, o_hbm.at[b, pl.ds(c * zS, zS)], sem.at[0])
            cp.start()
            cp.wait()
        if rem:  # static remainder chunk
            cp = pltpu.make_async_copy(
                zeros_ref.at[:rem],
                o_hbm.at[b, pl.ds(n_full * zS, rem)], sem.at[0])
            cp.start()
            cp.wait()


def _inplace_call(keep_i32, x3, *, tile_bytes):
    B, S, _ = x3.shape
    itemsize = jnp.dtype(x3.dtype).itemsize
    sub = max(8, 32 // itemsize)
    zS = max(sub, (tile_bytes // (_LANE * itemsize)) // sub * sub)
    zS = min(zS, S)
    n_full, rem = divmod(S, zS)

    kernel = partial(_inplace_kernel, zS=zS, n_full=n_full, rem=rem)
    return pl.pallas_call(
        kernel,
        out_shape=jax.ShapeDtypeStruct(x3.shape, x3.dtype),
        grid=(B,),
        in_specs=[pl.BlockSpec(memory_space=pltpu.MemorySpace.SMEM),
                  pl.BlockSpec(memory_space=pl.ANY)],
        out_specs=pl.BlockSpec(memory_space=pl.ANY),
        scratch_shapes=[pltpu.VMEM((zS, _LANE), x3.dtype),
                        pltpu.SemaphoreType.DMA((1,))],
        input_output_aliases={1: 0},  # x (input index 1) aliases output 0
        compiler_params=pltpu.CompilerParams(
            dimension_semantics=("parallel",)),
    )(keep_i32, x3)


# ------------------------------------------------------------------------
# Public wrapper.
# ------------------------------------------------------------------------
def noscale_dropout(x, rate: float, key, training: bool = True, *,
                    tile_bytes: int = 2 * 1024 * 1024,
                    min_pallas_bytes: int = 1 << 20,
                    in_place: bool = False):
    """Dropout without rescaling: zeroes whole batch samples with prob `rate`."""
    if (not training) or rate == 0.0:
        return x

    B = x.shape[0]
    keep = jax.random.bernoulli(key, p=1.0 - rate, shape=(B,))
    n = math.prod(x.shape[1:])
    itemsize = jnp.dtype(x.dtype).itemsize

    # Fallback: tiny tensors (launch + per-step overhead dominates) and feature
    # counts that are not lane multiples (pad + trim would add two HBM passes).
    if n % _LANE != 0 or x.size * itemsize < min_pallas_bytes:
        return x * keep.reshape((B,) + (1,) * (x.ndim - 1)).astype(x.dtype)

    keep_i32 = keep.astype(jnp.int32)
    S = n // _LANE
    x3 = x.reshape(B, S, _LANE)  # lane-dense view (metadata-only reshape)

    if in_place:
        out3 = _inplace_call(keep_i32, x3, tile_bytes=tile_bytes)
        return out3.reshape(x.shape)

    per_sample_bytes = S * _LANE * itemsize
    sub = max(8, 32 // itemsize)
    if per_sample_bytes >= tile_bytes:
        tS = max(sub, (tile_bytes // (_LANE * itemsize)) // sub * sub)
        tS = min(tS, S)
        out3 = _per_sample_call(keep_i32, x3, tS=tS)
    else:
        tB = max(1, min(B, tile_bytes // per_sample_bytes))
        out3 = _batched_call(keep_i32, x3, tB=tB)
    return out3.reshape(x.shape)


if __name__ == "__main__":
    key = jax.random.PRNGKey(0)
    k_x, k_mask = jax.random.split(key)
    rate = 0.5

    # Small NCHW input consistent with the module's usage.
    B, C, H, W = 2, 4, 16, 16
    x = jax.random.normal(k_x, (B, C, H, W), dtype=jnp.float32)
    keep_ref = jax.random.bernoulli(k_mask, p=1.0 - rate, shape=(B,)).astype(x.dtype)
    expected = x * keep_ref[:, None, None, None]

    # 1) Batched path (small per-sample data folds samples into one block).
    out = jax.block_until_ready(
        noscale_dropout(x, rate, k_mask, training=True, min_pallas_bytes=0))
    assert out.shape == x.shape and out.dtype == x.dtype
    assert jnp.allclose(out, expected), "batched Pallas path mismatch"

    # 2) Per-sample path with feature tiling (small tile_bytes forces it).
    x_big = jax.random.normal(k_x, (2, 4, 32, 32), dtype=jnp.float32)
    keep_b = jax.random.bernoulli(k_mask, p=1.0 - rate, shape=(2,)).astype(x_big.dtype)
    out_big = jax.block_until_ready(
        noscale_dropout(x_big, rate, k_mask, training=True,
                        tile_bytes=8 * 1024, min_pallas_bytes=0))
    assert jnp.allclose(out_big, x_big * keep_b[:, None, None, None]), \
        "per-sample Pallas path mismatch"

    # 3) In-place / aliased path (kept samples untouched, dropped zero-filled).
    out_ip = jax.block_until_ready(
        noscale_dropout(x, rate, k_mask, training=True,
                        min_pallas_bytes=0, in_place=True))
    assert jnp.allclose(out_ip, expected), "in-place Pallas path mismatch"

    # 4) bf16 input through the batched path (dtype robustness).
    x_bf = jax.random.normal(k_x, (2, 8, 32, 32), dtype=jnp.bfloat16)
    keep_bf = jax.random.bernoulli(k_mask, p=1.0 - rate, shape=(2,)).astype(x_bf.dtype)
    out_bf = jax.block_until_ready(
        noscale_dropout(x_bf, rate, k_mask, training=True, min_pallas_bytes=0))
    assert jnp.allclose(out_bf, x_bf * keep_bf[:, None, None, None])

    # 5) Non-128-multiple feature count -> fused plain-JAX fallback.
    x_odd = jax.random.normal(k_x, (2, 3, 5, 7), dtype=jnp.float32)
    keep_o = jax.random.bernoulli(k_mask, p=1.0 - rate, shape=(2,)).astype(x_odd.dtype)
    out_odd = jax.block_until_ready(
        noscale_dropout(x_odd, rate, k_mask, training=True, min_pallas_bytes=0))
    assert jnp.allclose(out_odd, x_odd * keep_o[:, None, None, None])

    # 6) Eval mode / rate == 0 passthrough.
    assert jnp.array_equal(noscale_dropout(x, rate, k_mask, training=False), x)
    assert jnp.array_equal(noscale_dropout(x, 0.0, k_mask, training=True), x)

    print("KERNEL_OK")
</pallas_src>

<mosaic_0001>
module attributes {stable_mosaic.version = 11 : i64} {
  func.func @_batched_kernel(%arg0: i32, %arg1: memref<2x1x1xi32, #tpu.memory_space<vmem>>, %arg2: memref<2x8x128xf32, #tpu.memory_space<vmem>>, %arg3: memref<2x8x128xf32, #tpu.memory_space<vmem>>) attributes {dimension_semantics = [#tpu.dimension_semantics<parallel>], iteration_bounds = array<i64: 1>, scalar_prefetch = 0 : i64, scratch_operands = 0 : i64, tpu.core_type = #tpu.core_type<tc>, window_params = [{transform_indices = @transform_0, window_bounds = array<i64: 2, 1, 1>}, {transform_indices = @transform_1, window_bounds = array<i64: 2, 8, 128>}, {transform_indices = @transform_2, window_bounds = array<i64: 2, 8, 128>}]} {
    %c0 = arith.constant 0 : index
    %c0_0 = arith.constant 0 : index
    %c0_1 = arith.constant 0 : index
    %0 = vector.load %arg2[%c0, %c0_0, %c0_1] : memref<2x8x128xf32, #tpu.memory_space<vmem>>, vector<2x8x128xf32>
    %c0_2 = arith.constant 0 : index
    %c0_3 = arith.constant 0 : index
    %c0_4 = arith.constant 0 : index
    %1 = vector.load %arg1[%c0_2, %c0_3, %c0_4] : memref<2x1x1xi32, #tpu.memory_space<vmem>>, vector<2x1x1xi32>
    %c0_i32 = arith.constant 0 : i32
    %2 = vector.broadcast %c0_i32 : i32 to vector<2x1x1xi32>
    %3 = arith.cmpi ne, %1, %2 : vector<2x1x1xi32>
    %cst = arith.constant 0.000000e+00 : f32
    %4 = vector.broadcast %cst : f32 to vector<2x8x128xf32>
    %5 = vector.shape_cast %3 : vector<2x1x1xi1> to vector<2x1x1xi1>
    %6 = vector.broadcast %5 : vector<2x1x1xi1> to vector<2x8x128xi1>
    %7 = arith.select %6, %0, %4 : vector<2x8x128xi1>, vector<2x8x128xf32>
    %c0_5 = arith.constant 0 : index
    %c0_6 = arith.constant 0 : index
    %c0_7 = arith.constant 0 : index
    %8 = vector.load %arg3[%c0_5, %c0_6, %c0_7] : memref<2x8x128xf32, #tpu.memory_space<vmem>>, vector<2x8x128xf32>
    tpu.vector_store %arg3[%c0_5, %c0_6, %c0_7], %7 {strides = array<i32>} : memref<2x8x128xf32, #tpu.memory_space<vmem>>, vector<2x8x128xf32>,
    return
  }
  func.func @transform_0(%arg0: i32) -> (i32, i32, i32) {
    %c0_i32 = arith.constant 0 : i32
    %c0_i32_0 = arith.constant 0 : i32
    %c0_i32_1 = arith.constant 0 : i32
    return %arg0, %c0_i32, %c0_i32_0 : i32, i32, i32
  }
  func.func @transform_1(%arg0: i32) -> (i32, i32, i32) {
    %c0_i32 = arith.constant 0 : i32
    %c0_i32_0 = arith.constant 0 : i32
    %c0_i32_1 = arith.constant 0 : i32
    return %arg0, %c0_i32, %c0_i32_0 : i32, i32, i32
  }
  func.func @transform_2(%arg0: i32) -> (i32, i32, i32) {
    %c0_i32 = arith.constant 0 : i32
    %c0_i32_0 = arith.constant 0 : i32
    %c0_i32_1 = arith.constant 0 : i32
    return %arg0, %c0_i32, %c0_i32_0 : i32, i32, i32
  }
}

</mosaic_0001>

<bundles_post_ra>
// kernel: tpu_custom_call.1
= control target key start
LH: loop header
LB: loop body
LE: loop exit
PB: predicated region body
PF: predicated region fallthrough
CT: control target
= control target key end

     0   :  { %7 = vsyncpa [#allocation3], 0  ;;  %s159_s0 = inlined_call_operand.vmem [shape: s32[2,1,1], index: 0, kind: input, shape index: {}]   ;;  %s160_s1 = inlined_call_operand.hbm [shape: f32[2,8,128], index: 1, kind: input, shape index: {}]   ;;  %s161_s2 = inlined_call_operand.hbm [shape: f32[2,8,128], index: 2, kind: output, shape index: {}]  }
   0x1   :  { %8 = vsyncpa [#allocation4], 0  ;;  %s121_s9 = smov [#allocation2]  }
   0x2   :  { %s16_s10 = sshll.u32 %s121_s9, 4  ;;  %s17_s10 = int_to_ptr.vmem [resolvable:$true] %s16_s10 }
   0x3   :  { %s85_s11 = scalar_lea.vmem %s17_s10, 256  ;;  %p90_p1 = scmp.lt.s32.totalorder %s17_s10, %s17_s10 }
   0x4   :  { %p86_p0 = scmp.ne.s32.totalorder %s17_s10, %s85_s11  ;;  %p91_p2 = scmp.lt.s32.totalorder %s85_s11, %s85_s11 }
   0x6   :  { %p92_p3 = por %p91_p2, %p90_p1 }
   0x8   :  { %p93_p4 = pnand %p92_p3, %p86_p0 }
   0xa   :  { %96 = shalt.err (!%p93_p4)
}
   0xb   :  { %s122_s12 = smov 128   ;;  %s123_s13 = smov 8  }
   0xc   :  { %22 = dma.hbm_to_vmem [thread:$0]  %s160_s1, 256, %s17_s10, [#allocation3], %s122_s12, %s122_s12, %s123_s13  }
   0xd   :  { %117 = dma.done.wait [#allocation3], 256  }
   0xe   :  { %118 = vsyncadd [#allocation3], 4294967040  ;;  %v34_v0 = vlaneseq  ;;  %v124_v1 = vmov 0   ;;  %v29_v4 = vld [vmem:[%s159_s0 + $0x1] sm:$0x1]  ;;  %s125_s1 = smov [#allocation5]  }
   0xf   :  { %76 = vset.pattern.permute.xlu0 %v124_v1  ;;  %v28_v5 = vld [vmem:[%s159_s0] sm:$0x1]  ;;  %vm31_vm0 = vcmp.ne.s32.totalorder %v29_v4, 0  ;;  %s59_s20 = sshll.u32 %s125_s1, 4  ;;  %v27_v13 = vld [vmem:[#allocation2 + $0x8] sm:$0xff]  ;;  %s60_s20 = int_to_ptr.vmem [resolvable:$true] %s59_s20 }
  0x10   :  { %v35_v2 = vshrl.u32 %v34_v0, 7  ;;  %vm30_vm1 = vcmp.ne.s32.totalorder %v28_v5, 0  ;;  %v33_v6 = vsel %vm31_vm0, 1, %v124_v1  ;;  %v26_v10 = vld [vmem:[#allocation2] sm:$0xff]  ;;  %s97_s0 = scalar_lea.vmem %s60_s20, 256  ;;  %p102_p6 = scmp.lt.s32.totalorder %s60_s20, %s60_s20 }
  0x11   :  { %v32_v7 = vsel %vm30_vm1, 1, %v124_v1  ;;  %p98_p5 = scmp.ne.s32.totalorder %s60_s20, %s97_s0  ;;  %p103_p7 = scmp.lt.s32.totalorder %s97_s0, %s97_s0 }
  0x12   :  { %v36_v3 = vsub.s32 0, %v35_v2 }
  0x13   :  { %p104_p8 = por %p103_p7, %p102_p6 }
  0x14   :  { %v37_v8 = vrot.slane %v32_v7, %v36_v3  ;;  %v41_v9 = vrot.slane %v33_v6, %v36_v3 }
  0x15   :  { %p105_p9 = pnand %p104_p8, %p98_p5 }
  0x16   :  { %43 = vperm.xlu0 %76, %v37_v8  }
  0x1a   :  { %46 = vperm.xlu0 %76, %v41_v9  }
  0x91   :  { %v44_v11 = vpop.permute.xlu0 %43 }
  0x92   :  { %vm48_vm2 = vcmp.eq.s32.totalorder %v44_v11, 1 }
  0x93   :  { %v50_v12 = vsel %vm48_vm2, %v26_v10, 0.0 }
  0x94   :  { %52 = vst [vmem:[#allocation5] sm:$0xff] %v50_v12 }
  0x95   :  { %v47_v14 = vpop.permute.xlu0 %46 }
  0x96   :  { %vm49_vm3 = vcmp.eq.s32.totalorder %v47_v14, 1 }
  0x97   :  { %v51_v15 = vsel %vm49_vm3, %v27_v13, 0.0 }
  0x98   :  { %53 = vst [vmem:[#allocation5 + $0x8] sm:$0xff] %v51_v15 }
  0x99   :  { %108 = shalt.err (!%p105_p9)
}
  0x9a   :  { %65 = dma.vmem_to_hbm [thread:$0]  %s60_s20, 256, %s161_s2, [#allocation4], %s122_s12, %s122_s12, %s123_s13  }
  0x9b   :  { %119 = dma.done.wait [#allocation4], 256  }
  0x9c   :  { %120 = vsyncadd [#allocation4], 4294967040 }
  0x9d   :  { %69 = vsyncpa [#allocation3], 1 }
  0x9e   :  { %70 = vsyncpa [#allocation4], 1 }

</bundles_post_ra>
